<compile_context>
chip_gen: v7x
topology: tpu7x:2x2x1
jax: 0.10.0
libtpu: 0.0.40
codegen_flags: <defaults>
</compile_context>

<pallas_src>
import functools

import jax
import jax.numpy as jnp
import numpy as np
from jax.experimental import pallas as pl
from jax.experimental.pallas import tpu as pltpu

BN_EPS = 1e-5
LANES = 128          # slab lane width (VMEM pads to 128 lanes regardless)


def _align8(n):
    return ((n + 7) // 8) * 8


def _slab_layout(D0, H1, D, C, Z):
    """Row layout of the single parameter slab. Each entry 8-row (tile) aligned."""
    entries = [
        ("w1",    D0,                2 * H1),   # [D0, 2H1]  (even | odd cols)
        ("b1",    1,                 2 * H1),
        ("w2",    H1,                D),
        ("b2",    1,                 D),
        ("gamma", 1,                 D),
        ("beta",  1,                 D),
        ("phiw",  4,                 D),        # rows (j,k): 00,01,10,11
        ("phib",  2,                 D),        # rows j
        ("expd",  D,                 C * D),    # 0/1 expansion matrix
        ("zwu",   Z,                 C * D),    # lane = c*D + d
        ("zbu",   Z,                 C * D),
        ("zwl",   Z,                 C * D),
        ("zbl",   Z,                 C * D),
        ("wout",  2 * D + 2 * C * D, 2 * C),    # fused [wbig ; -r2]
        ("bout",  1,                 2 * C),
    ]
    layout, row = {}, 0
    for name, nr, nc in entries:
        layout[name] = (row, nr, nc)
        row += _align8(nr)
    return layout, row


# ---------------------------------------------------------------------------
# One-time parameter repacking into a single VMEM slab (hoisted out of forward)
# ---------------------------------------------------------------------------
def pack_params(params):
    (W1, b1, W2, b2, gamma, beta, phiw, phib, Wu, Wu_b, Wl,
     zwu, zbu, zwl, zbl) = params
    f32 = jnp.float32
    D0 = W1.shape[1]
    H1 = W2.shape[1]
    D = W2.shape[0]
    C = Wu.shape[0]
    Z = zwu.shape[1]
    layout, total_rows = _slab_layout(D0, H1, D, C, Z)

    Wu_t, Wl_t = Wu.T.astype(f32), Wl.T.astype(f32)
    # [[Wu.T, Wl.T], [Wl.T, Wu.T]] so [phi_ab | phi_ba] @ wbig == logits pre-z.
    wbig = jnp.concatenate(
        [jnp.concatenate([Wu_t, Wl_t], axis=1),
         jnp.concatenate([Wl_t, Wu_t], axis=1)], axis=0)              # [2D, 2C]
    # 0/1 block matrix summing each D-sized lane group onto one connection col.
    r2 = (jnp.arange(2 * C * D)[:, None] // D
          == jnp.arange(2 * C)[None, :]).astype(f32)                  # [2CD, 2C]
    wout = jnp.concatenate([wbig, -r2], axis=0)                       # [2D+2CD, 2C]
    # expansion: (hab @ expd)[:, c*D + d] == hab[:, d]
    expd = jnp.tile(jnp.eye(D, dtype=f32), (1, C))                    # [D, C*D]

    pieces = {
        "w1":    jnp.concatenate([W1[0::2].T, W1[1::2].T], axis=1).astype(f32),
        "b1":    jnp.concatenate([b1[0::2], b1[1::2]])[None, :].astype(f32),
        "w2":    W2.T.astype(f32),
        "b2":    b2[None, :].astype(f32),
        "gamma": gamma[None, :].astype(f32),
        "beta":  beta[None, :].astype(f32),
        "phiw":  phiw.transpose(1, 2, 0).reshape(4, D).astype(f32),
        "phib":  phib.T.astype(f32),
        "expd":  expd,
        "zwu":   zwu.transpose(1, 2, 0).reshape(Z, C * D).astype(f32),
        "zbu":   zbu.transpose(1, 2, 0).reshape(Z, C * D).astype(f32),
        "zwl":   zwl.transpose(1, 2, 0).reshape(Z, C * D).astype(f32),
        "zbl":   zbl.transpose(1, 2, 0).reshape(Z, C * D).astype(f32),
        "wout":  wout,
        "bout":  jnp.concatenate([Wu_b, Wu_b])[None, :].astype(f32),
    }
    slab = jnp.zeros((total_rows, LANES), f32)
    for name, (row, nr, nc) in layout.items():
        slab = slab.at[row:row + nr, :nc].set(pieces[name])
    dims = dict(D0=D0, H1=H1, D=D, C=C, Z=Z)
    return slab, dims


# ---------------------------------------------------------------------------
# Fused kernel: MLP -> Maxout -> Linear -> BatchNorm1d -> phi/w/z -> logits
# ---------------------------------------------------------------------------
def _net_kernel(x_ref, slab_ref, logits_ref, h_ref, *, B, H1, D, C, Z, layout):
    def ld(name):
        row, nr, nc = layout[name]
        return slab_ref[row:row + nr, :nc]           # static slice -> cheap vld

    # ---- layer 1: single merged matmul, Maxout(pool=2) = max of column halves -
    x = x_ref[...]                                                    # [N*B, D0]
    y1 = jnp.dot(x, ld("w1"), preferred_element_type=jnp.float32) + ld("b1")
    h1 = jnp.maximum(y1[:, :H1], y1[:, H1:2 * H1])                    # [N*B, H1]
    h2 = jnp.dot(h1, ld("w2"), preferred_element_type=jnp.float32) + ld("b2")

    # ---- BatchNorm1d, training-mode batch stats over all N*B rows -------------
    mean = jnp.mean(h2, axis=0, keepdims=True)
    var = jnp.mean(jnp.square(h2 - mean), axis=0, keepdims=True)
    hn = (h2 - mean) * jax.lax.rsqrt(var + BN_EPS)
    hn = hn * ld("gamma") + ld("beta")
    h_ref[...] = hn                                                   # node-major h

    # ---- phi max-out on the stacked [ha; hb] slab ------------------------------
    hab = hn[:2 * B, :]                                               # [2B, D]
    phiw = ld("phiw")                                                 # [4, D]
    phib = ld("phib")                                                 # [2, D]
    d0 = hab - phib[0:1, :]
    mo0 = jnp.maximum(phiw[0:1, :] * d0, phiw[1:2, :] * d0)           # j = 0
    d1 = hab - phib[1:2, :]
    mo1 = jnp.maximum(phiw[2:3, :] * d1, phiw[3:4, :] * d1)           # j = 1
    phi_ab = mo1[B:] * mo0[:B]                                        # [B, D]
    phi_ba = mo1[:B] * mo0[B:]                                        # [B, D]

    # ---- z max-out term, lane-dense [2B, C*D]; replication done on the MXU -----
    h_exp = jnp.dot(hab, ld("expd"), preferred_element_type=jnp.float32)  # [2B, C*D]
    zwu, zbu = ld("zwu"), ld("zbu")
    zwl, zbl = ld("zwl"), ld("zbl")
    mu = h_exp * zwu[0:1, :] + zbu[0:1, :]
    ml = h_exp * zwl[0:1, :] + zbl[0:1, :]
    for z in range(1, Z):
        mu = jnp.maximum(mu, h_exp * zwu[z:z + 1, :] + zbu[z:z + 1, :])
        ml = jnp.maximum(ml, h_exp * zwl[z:z + 1, :] + zbl[z:z + 1, :])
    mu2 = jnp.square(mu)
    ml2 = jnp.square(ml)
    left = mu2[:B] + ml2[B:]                                          # zu_a^2 + zl_b^2
    right = ml2[:B] + mu2[B:]                                         # zl_a^2 + zu_b^2

    # ---- ONE fused output matmul: [phi_ab|phi_ba|left|right] @ [wbig;-r2] + b --
    lhs = jnp.concatenate([phi_ab, phi_ba, left, right], axis=1)      # [B, 2D+2CD]
    logits_ref[...] = (jnp.dot(lhs, ld("wout"), preferred_element_type=jnp.float32)
                       + ld("bout"))                                  # [B, 2C]


# ---------------------------------------------------------------------------
# Jitted wrapper: one pallas_call, 2 inputs, glue ops fused by XLA
# ---------------------------------------------------------------------------
def make_net_forward(*, D0, H1, D, C, Z):
    layout, _ = _slab_layout(D0, H1, D, C, Z)

    @jax.jit
    def net_forward(x, slab):
        """x: [B, N, D0] with N >= 2.  Returns (logits [B, 2C], h [B, N, D])."""
        B, N, _ = x.shape
        kernel = functools.partial(_net_kernel, B=B, H1=H1, D=D, C=C, Z=Z,
                                   layout=layout)
        # node-major so (node-0, node-1) rows are the leading contiguous 2B rows;
        # BN batch stats are permutation-invariant so this is exact.
        x_nm = jnp.transpose(x, (1, 0, 2)).reshape(N * B, D0).astype(jnp.float32)

        logits, h_nm = pl.pallas_call(
            kernel,
            out_shape=(jax.ShapeDtypeStruct((B, 2 * C), jnp.float32),
                       jax.ShapeDtypeStruct((N * B, D), jnp.float32)),
            in_specs=[pl.BlockSpec(memory_space=pltpu.MemorySpace.VMEM),
                      pl.BlockSpec(memory_space=pltpu.MemorySpace.VMEM)],
            out_specs=(pl.BlockSpec(memory_space=pltpu.MemorySpace.VMEM),
                       pl.BlockSpec(memory_space=pltpu.MemorySpace.VMEM)),
            compiler_params=pltpu.CompilerParams(
                # let XLA fuse the x transpose into the kernel input if it can
                allow_input_fusion=[True, False]),
        )(x_nm, slab)

        h = h_nm.reshape(N, B, D).transpose(1, 0, 2)
        return logits, h

    return net_forward


# ---------------------------------------------------------------------------
# Pure-JAX reference (mirrors the PyTorch forward exactly) for verification
# ---------------------------------------------------------------------------
def reference_forward(x, params):
    (W1, b1, W2, b2, gamma, beta, phiw, phib, Wu, Wu_b, Wl,
     zwu, zbu, zwl, zbl) = params
    B, N, _ = x.shape
    D = W2.shape[0]
    h = x @ W1.T + b1
    h = jnp.max(h.reshape(B, N, -1, 2), axis=-1)          # Maxout(pool=2)
    h = h @ W2.T + b2
    hf = h.reshape(-1, D)
    mean = hf.mean(axis=0)
    var = jnp.mean((hf - mean) ** 2, axis=0)
    hf = (hf - mean) / jnp.sqrt(var + BN_EPS) * gamma + beta
    h = hf.reshape(B, N, D)
    ha_mo = jnp.max(phiw[None] * (h[:, 0, :, None, None] - phib[None, :, :, None]), axis=3)
    hb_mo = jnp.max(phiw[None] * (h[:, 1, :, None, None] - phib[None, :, :, None]), axis=3)
    phi_ab = hb_mo[:, :, 1] * ha_mo[:, :, 0]
    phi_ba = ha_mo[:, :, 1] * hb_mo[:, :, 0]
    w_ab = jnp.concatenate([phi_ab @ Wu.T, phi_ab @ Wl.T], axis=1)
    wt_ba = jnp.concatenate([phi_ba @ Wl.T, phi_ba @ Wu.T], axis=1)
    logits = w_ab + wt_ba + jnp.concatenate([Wu_b, Wu_b])
    ha = h[:, 0, :]
    zu_a = jnp.max(zwu[None] * ha[:, :, None, None] + zbu[None], axis=2)
    zl_a = jnp.max(zwl[None] * ha[:, :, None, None] + zbl[None], axis=2)
    z_a = jnp.concatenate([jnp.sum(zu_a ** 2, 1), jnp.sum(zl_a ** 2, 1)], axis=1)
    hb = h[:, 1, :]
    zl_b = jnp.max(zwl[None] * hb[:, :, None, None] + zbl[None], axis=2)
    zu_b = jnp.max(zwu[None] * hb[:, :, None, None] + zbu[None], axis=2)
    z_b = jnp.concatenate([jnp.sum(zl_b ** 2, 1), jnp.sum(zu_b ** 2, 1)], axis=1)
    return logits - (z_a + z_b), h


if __name__ == "__main__":
    # Small shapes consistent with the module:
    # h_sizes = [8, 16, 8] (one hidden maxout layer), num_node = 4, batch = 8
    B, N = 8, 4
    D0, H1, D = 8, 16, 8
    Z = 2                            # z_order
    C = N * (N - 1) // 2             # num_conn / 2 (triu connectivity)

    key = jax.random.PRNGKey(0)
    keys = jax.random.split(key, 12)

    def xavier(k, out_f, in_f):
        lim = (6.0 / (in_f + out_f)) ** 0.5
        return jax.random.uniform(k, (out_f, in_f), jnp.float32, -lim, lim)

    W1 = xavier(keys[0], H1 * 2, D0)                       # Linear(D0, H1*pool_size)
    b1 = 0.1 * jax.random.normal(keys[1], (H1 * 2,), jnp.float32)
    W2 = xavier(keys[2], D, H1)                            # Linear(H1, D)
    b2 = 0.1 * jax.random.normal(keys[3], (D,), jnp.float32)
    gamma = jnp.ones((D,), jnp.float32)                    # BatchNorm1d affine params
    beta = jnp.zeros((D,), jnp.float32)
    # phi / z params are ones/zeros in __init__; perturb deterministically so the
    # max-out branches are non-trivial.
    phiw = jnp.ones((D, 2, 2), jnp.float32) + 0.1 * jax.random.normal(keys[4], (D, 2, 2), jnp.float32)
    phib = 0.1 * jax.random.normal(keys[5], (D, 2), jnp.float32)
    Wu = xavier(keys[6], C, D)
    Wu_b = 0.1 * jax.random.normal(keys[7], (C,), jnp.float32)
    Wl = xavier(keys[8], C, D)
    zwu = jnp.ones((D, Z, C), jnp.float32) + 0.1 * jax.random.normal(keys[9], (D, Z, C), jnp.float32)
    zbu = 0.1 * jax.random.normal(keys[10], (D, Z, C), jnp.float32)
    zwl = jnp.ones((D, Z, C), jnp.float32) - 0.1 * jax.random.normal(keys[9], (D, Z, C), jnp.float32)
    zbl = -0.1 * jax.random.normal(keys[10], (D, Z, C), jnp.float32)

    params = (W1, b1, W2, b2, gamma, beta, phiw, phib, Wu, Wu_b, Wl, zwu, zbu, zwl, zbl)
    slab, dims = pack_params(params)        # hoisted, done once
    net_forward = make_net_forward(**dims)

    x = jax.random.normal(keys[11], (B, N, D0), jnp.float32)

    logits, h = jax.block_until_ready(net_forward(x, slab))

    ref_logits, ref_h = reference_forward(x, params)
    assert logits.shape == (B, 2 * C) and h.shape == (B, N, D)
    assert np.allclose(np.asarray(h), np.asarray(ref_h), rtol=2e-3, atol=2e-3)
    assert np.allclose(np.asarray(logits), np.asarray(ref_logits), rtol=5e-3, atol=5e-3)
    print("KERNEL_OK")
</pallas_src>

<mosaic_0001>
module attributes {stable_mosaic.version = 11 : i64} {
  func.func @_net_kernel(%arg0: memref<32x8xf32, #tpu.memory_space<vmem>>, %arg1: memref<232x128xf32, #tpu.memory_space<vmem>>, %arg2: memref<8x12xf32, #tpu.memory_space<vmem>>, %arg3: memref<32x8xf32, #tpu.memory_space<vmem>>) attributes {dimension_semantics = [], scalar_prefetch = 0 : i64, scratch_operands = 0 : i64, tpu.core_type = #tpu.core_type<tc>} {
    %c0 = arith.constant 0 : index
    %c0_0 = arith.constant 0 : index
    %0 = vector.load %arg0[%c0, %c0_0] : memref<32x8xf32, #tpu.memory_space<vmem>>, vector<32x8xf32>
    %c0_1 = arith.constant 0 : index
    %c0_2 = arith.constant 0 : index
    %1 = vector.load %arg1[%c0_1, %c0_2] : memref<232x128xf32, #tpu.memory_space<vmem>>, vector<8x32xf32>
    %cst = arith.constant dense<0.000000e+00> : vector<32x32xf32>
    %2 = tpu.matmul %0, %1, %cst {dimension_numbers = #tpu.dot_dimension_numbers<[1], [0], [0], [1], [0, 0, 1, 1], [], []>} : vector<32x8xf32>, vector<8x32xf32>, vector<32x32xf32> -> vector<32x32xf32>
    %c8 = arith.constant 8 : index
    %c0_3 = arith.constant 0 : index
    %3 = vector.load %arg1[%c8, %c0_3] : memref<232x128xf32, #tpu.memory_space<vmem>>, vector<1x32xf32>
    %4 = vector.broadcast %3 : vector<1x32xf32> to vector<32x32xf32>
    %5 = arith.addf %2, %4 : vector<32x32xf32>
    %6 = vector.extract_strided_slice %5 {offsets = [0, 0], sizes = [32, 16], strides = [1, 1]} : vector<32x32xf32> to vector<32x16xf32>
    %7 = vector.extract_strided_slice %5 {offsets = [0, 16], sizes = [32, 16], strides = [1, 1]} : vector<32x32xf32> to vector<32x16xf32>
    %8 = arith.maximumf %6, %7 : vector<32x16xf32>
    %c16 = arith.constant 16 : index
    %c0_4 = arith.constant 0 : index
    %9 = vector.load %arg1[%c16, %c0_4] : memref<232x128xf32, #tpu.memory_space<vmem>>, vector<16x8xf32>
    %cst_5 = arith.constant dense<0.000000e+00> : vector<32x8xf32>
    %10 = tpu.matmul %8, %9, %cst_5 {dimension_numbers = #tpu.dot_dimension_numbers<[1], [0], [0], [1], [0, 0, 1, 1], [], []>} : vector<32x16xf32>, vector<16x8xf32>, vector<32x8xf32> -> vector<32x8xf32>
    %c32 = arith.constant 32 : index
    %c0_6 = arith.constant 0 : index
    %11 = vector.load %arg1[%c32, %c0_6] : memref<232x128xf32, #tpu.memory_space<vmem>>, vector<1x8xf32>
    %12 = vector.broadcast %11 : vector<1x8xf32> to vector<32x8xf32>
    %13 = arith.addf %10, %12 : vector<32x8xf32>
    %cst_7 = arith.constant dense<0.000000e+00> : vector<8xf32>
    %14 = vector.multi_reduction <add>, %13, %cst_7 [0] : vector<32x8xf32> to vector<8xf32>
    %15 = vector.shape_cast %14 : vector<8xf32> to vector<1x8xf32>
    %cst_8 = arith.constant 3.200000e+01 : f32
    %16 = vector.broadcast %cst_8 : f32 to vector<1x8xf32>
    %17 = arith.divf %15, %16 : vector<1x8xf32>
    %18 = vector.broadcast %17 : vector<1x8xf32> to vector<32x8xf32>
    %19 = arith.subf %13, %18 : vector<32x8xf32>
    %20 = arith.mulf %19, %19 : vector<32x8xf32>
    %cst_9 = arith.constant dense<0.000000e+00> : vector<8xf32>
    %21 = vector.multi_reduction <add>, %20, %cst_9 [0] : vector<32x8xf32> to vector<8xf32>
    %22 = vector.shape_cast %21 : vector<8xf32> to vector<1x8xf32>
    %cst_10 = arith.constant 3.200000e+01 : f32
    %23 = vector.broadcast %cst_10 : f32 to vector<1x8xf32>
    %24 = arith.divf %22, %23 : vector<1x8xf32>
    %25 = vector.broadcast %17 : vector<1x8xf32> to vector<32x8xf32>
    %26 = arith.subf %13, %25 : vector<32x8xf32>
    %cst_11 = arith.constant 9.99999974E-6 : f32
    %27 = vector.broadcast %cst_11 : f32 to vector<1x8xf32>
    %28 = arith.addf %24, %27 : vector<1x8xf32>
    %29 = math.rsqrt %28 : vector<1x8xf32>
    %30 = vector.broadcast %29 : vector<1x8xf32> to vector<32x8xf32>
    %31 = arith.mulf %26, %30 : vector<32x8xf32>
    %c40 = arith.constant 40 : index
    %c0_12 = arith.constant 0 : index
    %32 = vector.load %arg1[%c40, %c0_12] : memref<232x128xf32, #tpu.memory_space<vmem>>, vector<1x8xf32>
    %33 = vector.broadcast %32 : vector<1x8xf32> to vector<32x8xf32>
    %34 = arith.mulf %31, %33 : vector<32x8xf32>
    %c48 = arith.constant 48 : index
    %c0_13 = arith.constant 0 : index
    %35 = vector.load %arg1[%c48, %c0_13] : memref<232x128xf32, #tpu.memory_space<vmem>>, vector<1x8xf32>
    %36 = vector.broadcast %35 : vector<1x8xf32> to vector<32x8xf32>
    %37 = arith.addf %34, %36 : vector<32x8xf32>
    %c0_14 = arith.constant 0 : index
    %c0_15 = arith.constant 0 : index
    %38 = vector.load %arg3[%c0_14, %c0_15] : memref<32x8xf32, #tpu.memory_space<vmem>>, vector<32x8xf32>
    tpu.vector_store %arg3[%c0_14, %c0_15], %37 {strides = array<i32>} : memref<32x8xf32, #tpu.memory_space<vmem>>, vector<32x8xf32>,
    %39 = vector.extract_strided_slice %37 {offsets = [0, 0], sizes = [16, 8], strides = [1, 1]} : vector<32x8xf32> to vector<16x8xf32>
    %c56 = arith.constant 56 : index
    %c0_16 = arith.constant 0 : index
    %40 = vector.load %arg1[%c56, %c0_16] : memref<232x128xf32, #tpu.memory_space<vmem>>, vector<4x8xf32>
    %c64 = arith.constant 64 : index
    %c0_17 = arith.constant 0 : index
    %41 = vector.load %arg1[%c64, %c0_17] : memref<232x128xf32, #tpu.memory_space<vmem>>, vector<2x8xf32>
    %42 = vector.extract_strided_slice %41 {offsets = [0, 0], sizes = [1, 8], strides = [1, 1]} : vector<2x8xf32> to vector<1x8xf32>
    %43 = vector.broadcast %42 : vector<1x8xf32> to vector<16x8xf32>
    %44 = arith.subf %39, %43 : vector<16x8xf32>
    %45 = vector.extract_strided_slice %40 {offsets = [0, 0], sizes = [1, 8], strides = [1, 1]} : vector<4x8xf32> to vector<1x8xf32>
    %46 = vector.broadcast %45 : vector<1x8xf32> to vector<16x8xf32>
    %47 = arith.mulf %46, %44 : vector<16x8xf32>
    %48 = vector.extract_strided_slice %40 {offsets = [1, 0], sizes = [1, 8], strides = [1, 1]} : vector<4x8xf32> to vector<1x8xf32>
    %49 = vector.broadcast %48 : vector<1x8xf32> to vector<16x8xf32>
    %50 = arith.mulf %49, %44 : vector<16x8xf32>
    %51 = arith.maximumf %47, %50 : vector<16x8xf32>
    %52 = vector.extract_strided_slice %41 {offsets = [1, 0], sizes = [1, 8], strides = [1, 1]} : vector<2x8xf32> to vector<1x8xf32>
    %53 = vector.broadcast %52 : vector<1x8xf32> to vector<16x8xf32>
    %54 = arith.subf %39, %53 : vector<16x8xf32>
    %55 = vector.extract_strided_slice %40 {offsets = [2, 0], sizes = [1, 8], strides = [1, 1]} : vector<4x8xf32> to vector<1x8xf32>
    %56 = vector.broadcast %55 : vector<1x8xf32> to vector<16x8xf32>
    %57 = arith.mulf %56, %54 : vector<16x8xf32>
    %58 = vector.extract_strided_slice %40 {offsets = [3, 0], sizes = [1, 8], strides = [1, 1]} : vector<4x8xf32> to vector<1x8xf32>
    %59 = vector.broadcast %58 : vector<1x8xf32> to vector<16x8xf32>
    %60 = arith.mulf %59, %54 : vector<16x8xf32>
    %61 = arith.maximumf %57, %60 : vector<16x8xf32>
    %62 = vector.extract_strided_slice %61 {offsets = [8, 0], sizes = [8, 8], strides = [1, 1]} : vector<16x8xf32> to vector<8x8xf32>
    %63 = vector.extract_strided_slice %51 {offsets = [0, 0], sizes = [8, 8], strides = [1, 1]} : vector<16x8xf32> to vector<8x8xf32>
    %64 = arith.mulf %62, %63 : vector<8x8xf32>
    %65 = vector.extract_strided_slice %61 {offsets = [0, 0], sizes = [8, 8], strides = [1, 1]} : vector<16x8xf32> to vector<8x8xf32>
    %66 = vector.extract_strided_slice %51 {offsets = [8, 0], sizes = [8, 8], strides = [1, 1]} : vector<16x8xf32> to vector<8x8xf32>
    %67 = arith.mulf %65, %66 : vector<8x8xf32>
    %c72 = arith.constant 72 : index
    %c0_18 = arith.constant 0 : index
    %68 = vector.load %arg1[%c72, %c0_18] : memref<232x128xf32, #tpu.memory_space<vmem>>, vector<8x48xf32>
    %cst_19 = arith.constant dense<0.000000e+00> : vector<16x48xf32>
    %69 = tpu.matmul %39, %68, %cst_19 {dimension_numbers = #tpu.dot_dimension_numbers<[1], [0], [0], [1], [0, 0, 1, 1], [], []>} : vector<16x8xf32>, vector<8x48xf32>, vector<16x48xf32> -> vector<16x48xf32>
    %c80 = arith.constant 80 : index
    %c0_20 = arith.constant 0 : index
    %70 = vector.load %arg1[%c80, %c0_20] : memref<232x128xf32, #tpu.memory_space<vmem>>, vector<2x48xf32>
    %c88 = arith.constant 88 : index
    %c0_21 = arith.constant 0 : index
    %71 = vector.load %arg1[%c88, %c0_21] : memref<232x128xf32, #tpu.memory_space<vmem>>, vector<2x48xf32>
    %c96 = arith.constant 96 : index
    %c0_22 = arith.constant 0 : index
    %72 = vector.load %arg1[%c96, %c0_22] : memref<232x128xf32, #tpu.memory_space<vmem>>, vector<2x48xf32>
    %c104 = arith.constant 104 : index
    %c0_23 = arith.constant 0 : index
    %73 = vector.load %arg1[%c104, %c0_23] : memref<232x128xf32, #tpu.memory_space<vmem>>, vector<2x48xf32>
    %74 = vector.extract_strided_slice %70 {offsets = [0, 0], sizes = [1, 48], strides = [1, 1]} : vector<2x48xf32> to vector<1x48xf32>
    %75 = vector.broadcast %74 : vector<1x48xf32> to vector<16x48xf32>
    %76 = arith.mulf %69, %75 : vector<16x48xf32>
    %77 = vector.extract_strided_slice %71 {offsets = [0, 0], sizes = [1, 48], strides = [1, 1]} : vector<2x48xf32> to vector<1x48xf32>
    %78 = vector.broadcast %77 : vector<1x48xf32> to vector<16x48xf32>
    %79 = arith.addf %76, %78 : vector<16x48xf32>
    %80 = vector.extract_strided_slice %72 {offsets = [0, 0], sizes = [1, 48], strides = [1, 1]} : vector<2x48xf32> to vector<1x48xf32>
    %81 = vector.broadcast %80 : vector<1x48xf32> to vector<16x48xf32>
    %82 = arith.mulf %69, %81 : vector<16x48xf32>
    %83 = vector.extract_strided_slice %73 {offsets = [0, 0], sizes = [1, 48], strides = [1, 1]} : vector<2x48xf32> to vector<1x48xf32>
    %84 = vector.broadcast %83 : vector<1x48xf32> to vector<16x48xf32>
    %85 = arith.addf %82, %84 : vector<16x48xf32>
    %86 = vector.extract_strided_slice %70 {offsets = [1, 0], sizes = [1, 48], strides = [1, 1]} : vector<2x48xf32> to vector<1x48xf32>
    %87 = vector.broadcast %86 : vector<1x48xf32> to vector<16x48xf32>
    %88 = arith.mulf %69, %87 : vector<16x48xf32>
    %89 = vector.extract_strided_slice %71 {offsets = [1, 0], sizes = [1, 48], strides = [1, 1]} : vector<2x48xf32> to vector<1x48xf32>
    %90 = vector.broadcast %89 : vector<1x48xf32> to vector<16x48xf32>
    %91 = arith.addf %88, %90 : vector<16x48xf32>
    %92 = arith.maximumf %79, %91 : vector<16x48xf32>
    %93 = vector.extract_strided_slice %72 {offsets = [1, 0], sizes = [1, 48], strides = [1, 1]} : vector<2x48xf32> to vector<1x48xf32>
    %94 = vector.broadcast %93 : vector<1x48xf32> to vector<16x48xf32>
    %95 = arith.mulf %69, %94 : vector<16x48xf32>
    %96 = vector.extract_strided_slice %73 {offsets = [1, 0], sizes = [1, 48], strides = [1, 1]} : vector<2x48xf32> to vector<1x48xf32>
    %97 = vector.broadcast %96 : vector<1x48xf32> to vector<16x48xf32>
    %98 = arith.addf %95, %97 : vector<16x48xf32>
    %99 = arith.maximumf %85, %98 : vector<16x48xf32>
    %100 = arith.mulf %92, %92 : vector<16x48xf32>
    %101 = arith.mulf %99, %99 : vector<16x48xf32>
    %102 = vector.extract_strided_slice %100 {offsets = [0, 0], sizes = [8, 48], strides = [1, 1]} : vector<16x48xf32> to vector<8x48xf32>
    %103 = vector.extract_strided_slice %101 {offsets = [8, 0], sizes = [8, 48], strides = [1, 1]} : vector<16x48xf32> to vector<8x48xf32>
    %104 = arith.addf %102, %103 : vector<8x48xf32>
    %105 = vector.extract_strided_slice %101 {offsets = [0, 0], sizes = [8, 48], strides = [1, 1]} : vector<16x48xf32> to vector<8x48xf32>
    %106 = vector.extract_strided_slice %100 {offsets = [8, 0], sizes = [8, 48], strides = [1, 1]} : vector<16x48xf32> to vector<8x48xf32>
    %107 = arith.addf %105, %106 : vector<8x48xf32>
    %108 = tpu.concatenate %64, %67, %104, %107 in 1 : vector<8x8xf32>, vector<8x8xf32>, vector<8x48xf32>, vector<8x48xf32> -> vector<8x112xf32>
    %c112 = arith.constant 112 : index
    %c0_24 = arith.constant 0 : index
    %109 = vector.load %arg1[%c112, %c0_24] : memref<232x128xf32, #tpu.memory_space<vmem>>, vector<112x12xf32>
    %cst_25 = arith.constant dense<0.000000e+00> : vector<8x12xf32>
    %110 = tpu.matmul %108, %109, %cst_25 {dimension_numbers = #tpu.dot_dimension_numbers<[1], [0], [0], [1], [0, 0, 1, 1], [], []>} : vector<8x112xf32>, vector<112x12xf32>, vector<8x12xf32> -> vector<8x12xf32>
    %c224 = arith.constant 224 : index
    %c0_26 = arith.constant 0 : index
    %111 = vector.load %arg1[%c224, %c0_26] : memref<232x128xf32, #tpu.memory_space<vmem>>, vector<1x12xf32>
    %112 = vector.broadcast %111 : vector<1x12xf32> to vector<8x12xf32>
    %113 = arith.addf %110, %112 : vector<8x12xf32>
    %c0_27 = arith.constant 0 : index
    %c0_28 = arith.constant 0 : index
    %114 = vector.load %arg2[%c0_27, %c0_28] : memref<8x12xf32, #tpu.memory_space<vmem>>, vector<8x12xf32>
    tpu.vector_store %arg2[%c0_27, %c0_28], %113 {strides = array<i32>} : memref<8x12xf32, #tpu.memory_space<vmem>>, vector<8x12xf32>,
    return
  }
}

</mosaic_0001>

<bundles_post_ra>
// kernel: net_forward.2
= control target key start
LH: loop header
LB: loop body
LE: loop exit
PB: predicated region body
PF: predicated region fallthrough
CT: control target
= control target key end

     0   :  { %9 = vsyncpa [#allocation3], 0  ;;  %s972_s0 = inlined_call_operand.hbm [shape: f32[232,128], index: 0, kind: input, shape index: {}]   ;;  %s973_s1 = inlined_call_operand.vmem [shape: f32[4,8,8], index: 1, kind: input, shape index: {}]   ;;  %s974_s2 = inlined_call_operand.hbm [shape: f32[8,12], index: 2, kind: output, shape index: {0}]   ;;  %s975_s3 = inlined_call_operand.vmem [shape: f32[32,8], index: 3, kind: output, shape index: {1}]  }
   0x1   :  { %10 = vsyncpa [#allocation4], 0  ;;  %s849_s12 = smov [#allocation2]   ;;  %s801_s16 = scalar_lea.hbm %s972_s0, 3712 }
   0x2   :  { %s18_s13 = sshll.u32 %s849_s12, 4  ;;  %p802_p0 = scmp.ne.s32.totalorder %s972_s0, %s801_s16  ;;  %s19_s13 = int_to_ptr.vmem [resolvable:$true] %s18_s13 }
   0x3   :  { %p805_p1 = scmp.lt.u32.totalorder %s801_s16, %s972_s0 }
   0x5   :  { %p807_p2 = pnand %p805_p1, %p802_p0 }
   0x7   :  { %810 = shalt.err (!%p807_p2)
}
   0x8   :  { %s811_s21 = scalar_lea.vmem %s19_s13, 3712  ;;  %p816_p4 = scmp.lt.s32.totalorder %s19_s13, %s19_s13 }
   0x9   :  { %p812_p3 = scmp.ne.s32.totalorder %s19_s13, %s811_s21  ;;  %p817_p5 = scmp.lt.s32.totalorder %s811_s21, %s811_s21 }
   0xb   :  { %p818_p6 = por %p817_p5, %p816_p4 }
   0xd   :  { %p819_p7 = pnand %p818_p6, %p812_p3 }
   0xf   :  { %822 = shalt.err (!%p819_p7)
}
  0x10   :  { %s850_s22 = smov 128   ;;  %s851_s23 = smov 8  }
  0x11   :  { %24 = dma.hbm_to_vmem [thread:$0]  %s972_s0, 3712, %s19_s13, [#allocation3], %s850_s22, %s850_s22, %s851_s23  }
  0x12   :  { %845 = dma.done.wait [#allocation3], 3712  }
  0x13   :  { %846 = vsyncadd [#allocation3], 4294963584  ;;  %vm56_vm0 = vcmask 64512   ;;  %v50_v0 = vld [vmem:[#allocation2] sm:$0xff]  ;;  %v662_v2 = vld [vmem:[%s973_s1 + $0x8] sm:$0xff]  ;;  %s852_s6 = smov 112  }
  0x14   :  { %v28_v1 = vld [vmem:[%s973_s1] sm:$0xff]  ;;  %710 = vmatprep.subr.mxu0 %v50_v0  ;;  %v663_v3 = vld [vmem:[%s973_s1 + $0x10] sm:$0xff]  ;;  %v664_v4 = vld [vmem:[%s973_s1 + $0x18] sm:$0xff]  ;;  %vm181_vm1 = vcmask 130048   ;;  %vm854_vm2 = vmmov 0   ;;  %s857_s14 = smov 64  }
  0x15   :  { %712 = vmatprep.mubr.msk.f32.mxu0 %vm56_vm0, %v28_v1  ;;  %711 = vmatpush3.msra.mxu0 %v50_v0  ;;  %v174_v5 = vld [vmem:[#allocation2 + $0x10] sm:$0xff]  ;;  %v175_v6 = vld [vmem:[#allocation2 + $0x18] sm:$0xff]  ;;  %v665_v8 = vld [vmem:[#allocation2 + $0x8] ss:$0 sm:$0xff]  ;;  %vm546_vm3 = vcmask 523264   ;;  %vm567_vm4 = vcmask 916480  }
  0x16   :  { %713 = vmatmul.mubr.msk.f32.vlgmr.msra.gmra.mrb[0].mxu0 %vm56_vm0, %v662_v2  ;;  %v764_v7 = vpack.c.bf16 %v175_v6, %v174_v5  ;;  %v388_v25 = vld [vmem:[#allocation2 + $0x48] sm:$0xff]  ;;  %v670_v26 = vld [vmem:[#allocation2 + $0x20] ss:$0 sm:$0xff]  ;;  %s858_s15 = smov [#allocation5]   ;;  %vm641_vm5 = vcmask 97280  }
  0x17   :  { %715 = vmatprep.mubr.msk.f32.mxu0 %vm56_vm0, %v663_v3  ;;  %s649_s16 = sshll.u32 %s858_s15, 4  ;;  %s650_s16 = int_to_ptr.vmem [resolvable:$true] %s649_s16 }
  0x18   :  { %765 = vmatprep.subr.bf16.mxu0 %v764_v7  ;;  %s823_s17 = scalar_lea.vmem %s650_s16, 128  ;;  %p828_p9 = scmp.lt.s32.totalorder %s650_s16, %s650_s16 }
  0x19   :  { %767 = vmatpush3.bf16.msra.mxu0 %v764_v7  ;;  %p824_p8 = scmp.ne.s32.totalorder %s650_s16, %s823_s17  ;;  %p829_p10 = scmp.lt.s32.totalorder %s823_s17, %s823_s17 }
  0x1a   :  { %716 = vmatmul.mubr.msk.f32.gmra.mrb[2].mxu0 %vm56_vm0, %v664_v4  ;;  %728 = vmatprep.subr.mxu0 %v388_v25 }
  0x1b   :  { %p830_p11 = por %p829_p10, %p828_p9 }
  0x1d   :  { %p831_p12 = pnand %p830_p11, %p824_p8 }
  0xe9   :  { %v714_v9 = vpop.f32.mrb[0].mxu0 }
  0xea   :  { %v135_v10 = vpop.f32.mrb[1].mxu0  ;;  %v141_v14 = vadd.f32 %v714_v9, %v665_v8 }
  0xeb   :  { %v136_v11 = vadd.f32 %v665_v8, %v135_v10 }
  0xed   :  { %v717_v12 = vpop.f32.mrb[2].mxu0  ;;  %158 = vrot.lane.b32.xlu0 %v136_v11, %s852_s6 }
  0xee   :  { %v145_v13 = vpop.f32.mrb[3].mxu0  ;;  %v151_v16 = vadd.f32 %v717_v12, %v665_v8  ;;  %v345_v12 = vld [vmem:[#allocation2 + $0x40] sm:$0x3] }
  0xef   :  { %v146_v15 = vadd.f32 %v665_v8, %v145_v13  ;;  %v346_v8 = vlaneseq }
  0xf1   :  { %162 = vrot.lane.b32.xlu1 %v146_v15, %s852_s6  ;;  %160 = vrot.lane.b32.xlu0 %v141_v14, %s852_s6  ;;  %v347_v9 = vshrl.u32 %v346_v8, 7  ;;  %v559_v8 = vld [vmem:[#allocation2 + $0xc8] sm:$0xff] }
  0xf3   :  { %v920_v10 = vsub.s32 0, %v347_v9 }
  0xf5   :  { %164 = vrot.lane.b32.xlu1 %v151_v16, %s852_s6 }
 0x15f   :  { %v159_v17 = vpop.permute.xlu0 %158 }
 0x160   :  { %v170_v18 = vmax.f32 %v136_v11, %v159_v17  ;;  %v922_v11 = vsub.s32 1, %v347_v9 }
 0x162   :  { %722 = vmatprep.mubr.msk.f32.mxu0 %vm181_vm1, %v170_v18 }
 0x163   :  { %v163_v19 = vpop.permute.xlu1 %162  ;;  %v161_v20 = vpop.permute.xlu0 %160 }
 0x164   :  { %v172_v21 = vmax.f32 %v146_v15, %v163_v19  ;;  %v171_v22 = vmax.f32 %v141_v14, %v161_v20  ;;  %v675_v14 = vld [vmem:[#allocation2 + $0x28] ss:$0 sm:$0xff]  ;;  %v374_v15 = vsub.s32 2, %v347_v9  ;;  %v344_v20 = vld [vmem:[#allocation2 + $0x38] sm:$0xf] }
 0x166   :  { %723 = vmatmul.mubr.msk.f32.vlgmr.msra.gmra.mrb[4].mxu0 %vm181_vm1, %v171_v22  ;;  %v349_v22 = vrot.slane %v345_v12, %v920_v10 }
 0x167   :  { %v165_v23 = vpop.permute.xlu1 %164  ;;  %725 = vmatprep.mubr.msk.f32.mxu0 %vm181_vm1, %v172_v21  ;;  %729 = vmatpush3.msra.mxu0 %v388_v25  ;;  %v676_v21 = vld [vmem:[#allocation2 + $0x30] ss:$0 sm:$0xff] }
 0x168   :  { %v173_v24 = vmax.f32 %v151_v16, %v165_v23  ;;  %v369_v23 = vrot.slane %v345_v12, %v922_v11  ;;  %v560_v12 = vld [vmem:[#allocation2 + $0xd0] sm:$0xff] }
 0x16a   :  { %726 = vmatmul.mubr.msk.f32.gmra.mrb[6].mxu0 %vm181_vm1, %v173_v24  ;;  %v380_v24 = vsub.s32 3, %v347_v9 }
 0x239   :  { %v724_v27 = vpop.f32.mrb[4].mxu0 }
 0x23a   :  { %v266_v28 = vadd.f32 %v724_v27, %v670_v26  ;;  %v260_v29 = vpop.f32.mrb[5].mxu0 }
 0x23b   :  { %v261_v30 = vadd.f32 %v670_v26, %v260_v29  ;;  %v355_v29 = vrot.slane %v344_v20, %v920_v10 }
 0x23c   :  { %v280_v31 = vsel %vm56_vm0, %v266_v28, 0.0 }
 0x23d   :  { %v279_v32 = vsel %vm56_vm0, %v261_v30, 0.0  ;;  %v727_v33 = vpop.f32.mrb[6].mxu0 }
 0x23e   :  { %v281_v34 = vadd.f32 %v280_v31, %v279_v32  ;;  %v270_v35 = vpop.f32.mrb[7].mxu0  ;;  %v276_v36 = vadd.f32 %v727_v33, %v670_v26  ;;  %v375_v31 = vrot.slane %v344_v20, %v374_v15  ;;  %v470_v15 = vld [vmem:[#allocation2 + $0x50] sm:$0x3] }
 0x23f   :  { %v271_v37 = vadd.f32 %v670_v26, %v270_v35 }
 0x240   :  { %v284_v40 = vsel %vm56_vm0, %v276_v36, 0.0 }
 0x241   :  { %v282_v38 = vsel %vm56_vm0, %v271_v37, 0.0 }
 0x242   :  { %v283_v39 = vadd.f32 %v282_v38, %v281_v34 }
 0x244   :  { %v285_v41 = vadd.f32 %v284_v40, %v283_v39 }
 0x246   :  { %v286_v42 = vrot.slane %v285_v41, 4 }
 0x248   :  { %v287_v43 = vadd.f32 %v286_v42, %v285_v41 }
 0x24a   :  { %v288_v44 = vrot.slane %v287_v43, 2 }
 0x24c   :  { %v289_v45 = vadd.f32 %v288_v44, %v287_v43 }
 0x24e   :  { %v290_v46 = vrot.slane %v289_v45, 1 }
 0x250   :  { %v291_v47 = vadd.f32 %v290_v46, %v289_v45 }
 0x252   :  { %v293_v48 = vmul.f32 0.03125, %v291_v47 }
 0x254   :  { %v294_v49 = vsub.f32 %v261_v30, %v293_v48  ;;  %v295_v50 = vsub.f32 %v266_v28, %v293_v48  ;;  %v296_v51 = vsub.f32 %v271_v37, %v293_v48  ;;  %v297_v52 = vsub.f32 %v276_v36, %v293_v48 }
 0x255   :  { %v361_v30 = vrot.slane %v344_v20, %v922_v11  ;;  %v381_v36 = vrot.slane %v344_v20, %v380_v24 }
 0x256   :  { %v298_v53 = vmul.f32 %v294_v49, %v294_v49  ;;  %v299_v54 = vmul.f32 %v295_v50, %v295_v50  ;;  %v300_v55 = vmul.f32 %v296_v51, %v296_v51  ;;  %v301_v56 = vmul.f32 %v297_v52, %v297_v52 }
 0x258   :  { %v302_v57 = vsel %vm56_vm0, %v298_v53, 0.0  ;;  %v303_v58 = vsel %vm56_vm0, %v299_v54, 0.0  ;;  %v305_v60 = vsel %vm56_vm0, %v300_v55, 0.0  ;;  %v307_v62 = vsel %vm56_vm0, %v301_v56, 0.0  ;;  %v548_v55 = vld [vmem:[#allocation2 + $0x70] sm:$0xff]  ;;  %v549_v56 = vld [vmem:[#allocation2 + $0x78] sm:$0xff] }
 0x259   :  { %v304_v59 = vadd.f32 %v303_v58, %v302_v57  ;;  %v550_v57 = vld [vmem:[#allocation2 + $0x80] sm:$0xff]  ;;  %v853_v58 = vmov 0.0|0.0  }
 0x25a   :  { %768 = vmatprep.subr.bf16.mxu1 %v853_v58 }
 0x25b   :  { %v306_v61 = vadd.f32 %v305_v60, %v304_v59  ;;  %v769_v59 = vpack.c.bf16 %v549_v56, %v548_v55  ;;  %v551_v60 = vld [vmem:[#allocation2 + $0x88] sm:$0xff] }
 0x25d   :  { %v308_v63 = vadd.f32 %v307_v62, %v306_v61  ;;  %770 = vmatpush3.bf16.msra.mxu1 %v769_v59  ;;  %v772_v61 = vpack.c.bf16 %v551_v60, %v550_v57  ;;  %v552_v62 = vld [vmem:[#allocation2 + $0x90] sm:$0xff] }
 0x25e   :  { %771 = vmatprep.subr.bf16.mxu1 %v853_v58 }
 0x25f   :  { %v309_v0 = vrot.slane %v308_v63, 4 }
 0x261   :  { %v310_v1 = vadd.f32 %v309_v0, %v308_v63  ;;  %v553_v63 = vld [vmem:[#allocation2 + $0x98] sm:$0xff]  ;;  %773 = vmatpush3.bf16.msra.mxu1 %v772_v61  ;;  %v679_v61 = vld [vmem:[#allocation2 + $0xe0] ss:$0 sm:$0xff] }
 0x262   :  { %v775_v0 = vpack.c.bf16 %v553_v63, %v552_v62  ;;  %774 = vmatprep.subr.bf16.mxu1 %v853_v58 }
 0x263   :  { %v311_v2 = vrot.slane %v310_v1, 2 }
 0x265   :  { %v312_v3 = vadd.f32 %v311_v2, %v310_v1  ;;  %v554_v1 = vld [vmem:[#allocation2 + $0xa0] sm:$0xff]  ;;  %v555_v2 = vld [vmem:[#allocation2 + $0xa8] sm:$0xff]  ;;  %776 = vmatpush3.bf16.msra.mxu1 %v775_v0 }
 0x266   :  { %777 = vmatprep.subr.bf16.mxu1 %v853_v58 }
 0x267   :  { %v313_v4 = vrot.slane %v312_v3, 1 }
 0x269   :  { %v314_v5 = vadd.f32 %v313_v4, %v312_v3  ;;  %v778_v3 = vpack.c.bf16 %v555_v2, %v554_v1  ;;  %v556_v4 = vld [vmem:[#allocation2 + $0xb0] sm:$0xff] }
 0x26b   :  { %v315_v6 = vmul.f32 0.03125, %v314_v5  ;;  %v557_v5 = vld [vmem:[#allocation2 + $0xb8] sm:$0xff]  ;;  %779 = vmatpush3.bf16.msra.mxu1 %v778_v3 }
 0x26c   :  { %780 = vmatprep.subr.bf16.mxu1 %v853_v58 }
 0x26d   :  { %v316_v7 = vadd.f32 1e-05, %v315_v6  ;;  %v781_v6 = vpack.c.bf16 %v557_v5, %v556_v4 }
 0x26f   :  { %799 = vrsqrt.f32 %v316_v7  ;;  %v558_v7 = vld [vmem:[#allocation2 + $0xc0] sm:$0xff]  ;;  %782 = vmatpush3.bf16.msra.mxu1 %v781_v6 }
 0x270   :  { %v784_v9 = vpack.c.bf16 %v559_v8, %v558_v7  ;;  %783 = vmatprep.subr.bf16.mxu1 %v853_v58 }
 0x273   :  { %785 = vmatpush3.bf16.msra.mxu1 %v784_v9 }
 0x274   :  { %786 = vmatprep.subr.bf16.mxu1 %v853_v58 }
 0x279   :  { %v800_v13 = vpop.eup %799 }
 0x27a   :  { %v319_v16 = vmul.f32 %v800_v13, %v295_v50  ;;  %v320_v17 = vmul.f32 %v800_v13, %v296_v51  ;;  %v321_v18 = vmul.f32 %v800_v13, %v297_v52  ;;  %v318_v19 = vmul.f32 %v800_v13, %v294_v49  ;;  %v561_v13 = vld [vmem:[#allocation2 + $0xd8] sm:$0xff] }
 0x27c   :  { %v328_v25 = vmul.f32 %v675_v14, %v319_v16  ;;  %v329_v26 = vmul.f32 %v675_v14, %v320_v17  ;;  %v330_v27 = vmul.f32 %v675_v14, %v321_v18  ;;  %v327_v28 = vmul.f32 %v675_v14, %v318_v19  ;;  %v472_v16 = vld [vmem:[#allocation2 + $0x60] sm:$0x3]  ;;  %v471_v17 = vld [vmem:[#allocation2 + $0x58] sm:$0x3]  ;;  %v473_v18 = vld [vmem:[#allocation2 + $0x68] sm:$0x3] }
 0x27d   :  { %v787_v14 = vpack.c.bf16 %v561_v13, %v560_v12  ;;  %v477_v19 = vrot.slane %v470_v15, %v920_v10  ;;  %v489_v20 = vrot.slane %v472_v16, %v920_v10  ;;  %v495_v24 = vrot.slane %v473_v18, %v920_v10 }
 0x27e   :  { %v337_v32 = vadd.f32 %v676_v21, %v328_v25  ;;  %v338_v33 = vadd.f32 %v676_v21, %v329_v26  ;;  %v339_v34 = vadd.f32 %v676_v21, %v330_v27  ;;  %v336_v35 = vadd.f32 %v676_v21, %v327_v28 }
 0x27f   :  { %788 = vmatpush3.bf16.msra.mxu1 %v787_v14  ;;  %v501_v21 = vrot.slane %v470_v15, %v922_v11  ;;  %v507_v25 = vrot.slane %v471_v17, %v922_v11  ;;  %v521_v26 = vrot.slane %v473_v18, %v922_v11 }
 0x280   :  { %341 = vst.msk [vmem:[%s975_s3 + $0x8] sm:$0xff] %vm56_vm0, %v337_v32  ;;  %342 = vst.msk [vmem:[%s975_s3 + $0x10] sm:$0xff] %vm56_vm0, %v338_v33  ;;  %730 = vmatprep.mubr.msk.f32.mxu0 %vm56_vm0, %v336_v35  ;;  %v351_v37 = vsub.f32 %v337_v32, %v349_v22  ;;  %v370_v38 = vsub.f32 %v336_v35, %v369_v23  ;;  %v371_v39 = vsub.f32 %v337_v32, %v369_v23  ;;  %v855_v33 = vmov 0.0  }
 0x281   :  { %343 = vst.msk [vmem:[%s975_s3 + $0x18] sm:$0xff] %vm56_vm0, %v339_v34  ;;  %340 = vst.msk [vmem:[%s975_s3] sm:$0xff] %vm56_vm0, %v336_v35  ;;  %v350_v40 = vsub.f32 %v336_v35, %v349_v22  ;;  %731 = vmatmul.mubr.msk.f32.vlgmr.msra.gmra.mrb[8].mxu0 %vm56_vm0, %v337_v32  ;;  %v515_v22 = vrot.slane %v472_v16, %v922_v11  ;;  %v483_v23 = vrot.slane %v471_v17, %v920_v10  ;;  %s856_s3 = smov 16  }
 0x282   :  { %v357_v41 = vmul.f32 %v355_v29, %v351_v37  ;;  %v363_v42 = vmul.f32 %v361_v30, %v351_v37  ;;  %v376_v43 = vmul.f32 %v375_v31, %v370_v38  ;;  %v377_v44 = vmul.f32 %v375_v31, %v371_v39  ;;  %761 = vmatprep.mubr.msk.f32.mxu1 %vm854_vm2, %v855_v33 }
 0x283   :  { %v382_v45 = vmul.f32 %v381_v36, %v370_v38  ;;  %v383_v46 = vmul.f32 %v381_v36, %v371_v39  ;;  %v356_v47 = vmul.f32 %v355_v29, %v350_v40  ;;  %v362_v48 = vmul.f32 %v361_v30, %v350_v40 }
 0x284   :  { %v365_v49 = vmax.f32 %v357_v41, %v363_v42 }
 0x285   :  { %v384_v50 = vmax.f32 %v376_v43, %v382_v45  ;;  %v385_v51 = vmax.f32 %v377_v44, %v383_v46  ;;  %v364_v52 = vmax.f32 %v356_v47, %v362_v48 }
 0x287   :  { %v387_v53 = vmul.f32 %v384_v50, %v365_v49  ;;  %v946_v54 = vmul.f32 %v385_v51, %v364_v52 }
 0x289   :  { %533 = vrot.lane.b32.xlu0 %v387_v53, %s851_s23 }
 0x2fb   :  { %v534_v55 = vpop.permute.xlu0 %533 }
 0x2fc   :  { %v544_v56 = vsel %vm56_vm0, %v946_v54, %v534_v55 }
 0x354   :  { %v732_v27 = vpop.f32.mrb[8].mxu0 }
 0x355   :  { %v461_v28 = vpop.f32.mrb[9].mxu0  ;;  %v479_v29 = vmul.f32 %v732_v27, %v477_v19  ;;  %v491_v30 = vmul.f32 %v732_v27, %v489_v20  ;;  %v503_v31 = vmul.f32 %v732_v27, %v501_v21  ;;  %v517_v32 = vmul.f32 %v732_v27, %v515_v22 }
 0x356   :  { %v478_v34 = vmul.f32 %v477_v19, %v461_v28  ;;  %v490_v35 = vmul.f32 %v489_v20, %v461_v28  ;;  %v502_v36 = vmul.f32 %v501_v21, %v461_v28  ;;  %v516_v37 = vmul.f32 %v515_v22, %v461_v28 }
 0x357   :  { %v497_v38 = vadd.f32 %v495_v24, %v491_v30  ;;  %v523_v39 = vadd.f32 %v521_v26, %v517_v32  ;;  %v485_v10 = vadd.f32 %v483_v23, %v479_v29  ;;  %v509_v40 = vadd.f32 %v507_v25, %v503_v31 }
 0x358   :  { %v484_v41 = vadd.f32 %v483_v23, %v478_v34  ;;  %v496_v42 = vadd.f32 %v495_v24, %v490_v35  ;;  %v508_v11 = vadd.f32 %v507_v25, %v502_v36  ;;  %v522_v43 = vadd.f32 %v521_v26, %v516_v37 }
 0x359   :  { %v525_v44 = vmax.f32 %v497_v38, %v523_v39  ;;  %v511_v45 = vmax.f32 %v485_v10, %v509_v40 }
 0x35a   :  { %v510_v46 = vmax.f32 %v484_v41, %v508_v11  ;;  %v524_v47 = vmax.f32 %v496_v42, %v522_v43 }
 0x35b   :  { %v529_v48 = vmul.f32 %v525_v44, %v525_v44  ;;  %v527_v49 = vmul.f32 %v511_v45, %v511_v45 }
 0x35c   :  { %v526_v50 = vmul.f32 %v510_v46, %v510_v46  ;;  %v528_v51 = vmul.f32 %v524_v47, %v524_v47 }
 0x35e   :  { %v530_v52 = vadd.f32 %v529_v48, %v526_v50  ;;  %v531_v53 = vadd.f32 %v528_v51, %v527_v49 }
 0x360   :  { %537 = vrot.lane.b32.xlu1 %v530_v52, %s856_s3  ;;  %541 = vrot.lane.b32.xlu0 %v531_v53, %s857_s14 }
 0x3d2   :  { %v538_v57 = vpop.permute.xlu1 %537  ;;  %v542_v58 = vpop.permute.xlu0 %541 }
 0x3d3   :  { %v545_v59 = vsel %vm181_vm1, %v544_v56, %v538_v57 }
 0x3d4   :  { %v547_v60 = vsel %vm546_vm3, %v545_v59, %v542_v58 }
 0x3d5   :  { %762 = vmatmul.mubr.msk.f32.vlgmr.msra.gmra.mrb[0].mxu1 %vm567_vm4, %v547_v60 }
 0x4a8   :  { %v637_v62 = vpop.f32.mrb[0].mxu1 }
 0x4a9   :  { %v638_v63 = vadd.f32 %v679_v61, %v637_v62  ;;  %v763_v0 = vpop.f32.mrb[1].mxu1 }
 0x4ab   :  { %642 = vst.msk [vmem:[#allocation5] sm:$0xff] %vm641_vm5, %v638_v63 }
 0x4ac   :  { %834 = shalt.err (!%p831_p12)
}
 0x4ad   :  { %s835_s20 = scalar_lea.hbm %s974_s2, 128 }
 0x4ae   :  { %p836_p13 = scmp.ne.s32.totalorder %s974_s2, %s835_s20  ;;  %p839_p0 = scmp.lt.u32.totalorder %s835_s20, %s974_s2 }
 0x4b0   :  { %p841_p1 = pnand %p839_p0, %p836_p13 }
 0x4b2   :  { %844 = shalt.err (!%p841_p1)
}
 0x4b3   :  { %652 = dma.vmem_to_hbm [thread:$0]  %s650_s16, 128, %s974_s2, [#allocation4]  }
 0x4b4   :  { %847 = dma.done.wait [#allocation4], 128  }
 0x4b5   :  { %848 = vsyncadd [#allocation4], 4294967168 }
 0x4b6   :  { %660 = vsyncpa [#allocation3], 1 }
 0x4b7   :  { %661 = vsyncpa [#allocation4], 1 }

</bundles_post_ra>
